<compile_context>
chip_gen: v5e
topology: v5e:2x2
jax: 0.10.0
libtpu: 0.0.40
codegen_flags: <defaults>
</compile_context>

<pallas_src>
import functools

import numpy as np
import jax
import jax.numpy as jnp
from jax.experimental import pallas as pl
from jax.experimental.pallas import tpu as pltpu

LANE = 128
VMEM_LIMIT = 32 * 1024 * 1024     # scoped VMEM cap requested per kernel
TILE_BUDGET = 8 * 1024 * 1024     # working-set target for the streaming 1x1 kernels
BH_BUDGET = 10 * 1024 * 1024      # working-set target for the grouped-conv band kernel
PAD_L = 8                         # 8-aligned left guard in the conv2 band buffer


def _round_up(x, m):
    return (x + m - 1) // m * m


def _pick_rows(hw, bytes_per_row, budget_bytes):
    """Largest multiple-of-8 divisor of hw whose working set fits the budget."""
    limit = max(8, budget_bytes // max(bytes_per_row, 1))
    best = 0
    for t in range(8, min(hw, limit) + 1, 8):
        if hw % t == 0:
            best = t
    # TODO(synk): if hw has no multiple-of-8 divisor under the budget we fall back to the
    # full spatial plane (block dim == array dim); fine for typical CNN sizes.
    return best if best else hw


def _pick_bh(H, W, Wp, C0cp, C1cp, n_chunks, cin_ch, cout_ch, budget, max_bh=None):
    """Largest band height dividing H whose K2 working set fits the VMEM budget."""
    cap = min(H, max_bh) if max_bh else min(H, 32)
    best = 1
    for bh in range(1, cap + 1):
        if H % bh:
            continue
        need = (2 * (bh + 2) * Wp * C0cp * 2              # band double buffer (bf16)
                + 2 * bh * W * C1cp * 2                   # output double buffer (bf16)
                + 9 * n_chunks * cin_ch * cout_ch * 2     # packed weights (bf16)
                + bh * Wp * (3 * cin_ch * 2 + 4 * cout_ch * 4))  # live value temporaries
        if need <= budget:
            best = bh
    return best


# ---------------------------------------------------------------------------
# K1: fused [shortcut 1x1 | conv1 1x1] matmul + folded BN.
#     One MXU matmul over x; the result is split (lane-aligned) into the residual
#     output r (no ReLU) and the conv1 output z1 (ReLU).
# ---------------------------------------------------------------------------
def _conv1_sc_kernel(x_ref, w_ref, scale_ref, bias_ref, r_ref, z_ref, *, n_sc):
    y = jnp.dot(x_ref[0], w_ref[...], preferred_element_type=jnp.float32)
    y = y * scale_ref[...] + bias_ref[...]
    r_ref[0] = y[:, :n_sc].astype(r_ref.dtype)
    z_ref[0] = jnp.maximum(y[:, n_sc:], 0.0).astype(z_ref.dtype)


def _conv1_kernel(x_ref, w_ref, scale_ref, bias_ref, z_ref):
    y = jnp.dot(x_ref[0], w_ref[...], preferred_element_type=jnp.float32)
    y = y * scale_ref[...] + bias_ref[...]
    z_ref[0] = jnp.maximum(y, 0.0).astype(z_ref.dtype)


def conv1_fused(x3, w, scale, bias, *, n_sc, tm):
    N, HW, CinP = x3.shape
    CTOT = w.shape[1]
    grid = (N, HW // tm)
    in_specs = [
        pl.BlockSpec((1, tm, CinP), lambda n, j: (n, j, 0)),
        pl.BlockSpec((CinP, CTOT), lambda n, j: (0, 0)),
        pl.BlockSpec((1, CTOT), lambda n, j: (0, 0)),
        pl.BlockSpec((1, CTOT), lambda n, j: (0, 0)),
    ]
    if n_sc > 0:
        c0 = CTOT - n_sc
        out_shape = (jax.ShapeDtypeStruct((N, HW, n_sc), jnp.bfloat16),
                     jax.ShapeDtypeStruct((N, HW, c0), jnp.bfloat16))
        out_specs = (pl.BlockSpec((1, tm, n_sc), lambda n, j: (n, j, 0)),
                     pl.BlockSpec((1, tm, c0), lambda n, j: (n, j, 0)))
        kern = functools.partial(_conv1_sc_kernel, n_sc=n_sc)
    else:
        out_shape = jax.ShapeDtypeStruct((N, HW, CTOT), jnp.bfloat16)
        out_specs = pl.BlockSpec((1, tm, CTOT), lambda n, j: (n, j, 0))
        kern = _conv1_kernel
    return pl.pallas_call(
        kern,
        out_shape=out_shape,
        grid_spec=pltpu.PrefetchScalarGridSpec(
            num_scalar_prefetch=0, grid=grid,
            in_specs=in_specs, out_specs=out_specs),
        compiler_params=pltpu.CompilerParams(
            dimension_semantics=("parallel", "parallel"),
            vmem_limit_bytes=VMEM_LIMIT),
    )(x3, w, scale, bias)


# ---------------------------------------------------------------------------
# K2: grouped 3x3 conv + folded BN + ReLU.
#   grid = (N, H // BH) row bands.  Each band (interior rows + two gated halo-row DMAs)
#   is fetched straight from z1 in HBM (pl.ANY) into a double-buffered VMEM band with an
#   8-aligned guard border; out-of-image rows / guard columns are masked in compute.
#   Per (kw, chunk) the three kh taps are summed in registers/values and stored once.
# ---------------------------------------------------------------------------
def _grouped_conv3x3_kernel(z1_hbm, w_ref, scale_ref, bias_ref, o_ref,
                            xband_ref, sem_ref, *,
                            BH, H, W, Wp, n_bands, n_chunks, cin_ch, cout_ch):
    n = pl.program_id(0)
    b = pl.program_id(1)
    slot = b % 2

    def start_band(band, slot_):
        row0 = band * BH
        pltpu.make_async_copy(
            z1_hbm.at[n, pl.ds(row0, BH)],
            xband_ref.at[slot_, pl.ds(1, BH), pl.ds(PAD_L, W)],
            sem_ref.at[0, slot_]).start()

        @pl.when(band > 0)
        def _():
            pltpu.make_async_copy(
                z1_hbm.at[n, pl.ds(row0 - 1, 1)],
                xband_ref.at[slot_, pl.ds(0, 1), pl.ds(PAD_L, W)],
                sem_ref.at[1, slot_]).start()

        @pl.when(band < n_bands - 1)
        def _():
            pltpu.make_async_copy(
                z1_hbm.at[n, pl.ds(row0 + BH, 1)],
                xband_ref.at[slot_, pl.ds(BH + 1, 1), pl.ds(PAD_L, W)],
                sem_ref.at[2, slot_]).start()

    def wait_band(band, slot_):
        row0 = band * BH
        pltpu.make_async_copy(
            z1_hbm.at[n, pl.ds(row0, BH)],
            xband_ref.at[slot_, pl.ds(1, BH), pl.ds(PAD_L, W)],
            sem_ref.at[0, slot_]).wait()

        @pl.when(band > 0)
        def _():
            pltpu.make_async_copy(
                z1_hbm.at[n, pl.ds(row0 - 1, 1)],
                xband_ref.at[slot_, pl.ds(0, 1), pl.ds(PAD_L, W)],
                sem_ref.at[1, slot_]).wait()

        @pl.when(band < n_bands - 1)
        def _():
            pltpu.make_async_copy(
                z1_hbm.at[n, pl.ds(row0 + BH, 1)],
                xband_ref.at[slot_, pl.ds(BH + 1, 1), pl.ds(PAD_L, W)],
                sem_ref.at[2, slot_]).wait()

    @pl.when(b == 0)
    def _():
        start_band(b, slot)                 # first band of this image

    @pl.when(b + 1 < n_bands)
    def _():
        start_band(b + 1, (b + 1) % 2)      # prefetch next band

    wait_band(b, slot)

    # compute-side masks: guard columns outside [PAD_L, PAD_L+W) and out-of-image halo rows
    rows = jax.lax.broadcasted_iota(jnp.int32, (BH, Wp), 0)
    cols = jax.lax.broadcasted_iota(jnp.int32, (BH, Wp), 1)
    col_ok = jnp.logical_and(cols >= PAD_L, cols < PAD_L + W)
    base = b * BH - 1
    masks = []
    for kh in range(3):
        img_row = base + kh + rows
        m = jnp.logical_and(col_ok,
                            jnp.logical_and(img_row >= 0, img_row < H))
        masks.append(m[:, :, None])

    xv = xband_ref.at[slot]                 # (BH+2, Wp, C0cp) view of the current band
    for ci in range(n_chunks):
        c0 = ci * cin_ch
        o0 = ci * cout_ch
        xs = []
        for kh in range(3):
            xk = xv[kh:kh + BH, :, c0:c0 + cin_ch]
            xk = jnp.where(masks[kh], xk, jnp.zeros_like(xk))
            xs.append(xk.reshape(BH * Wp, cin_ch))
        parts = []
        for kw in range(3):
            s = None
            for kh in range(3):
                d = jnp.dot(xs[kh], w_ref[kh * 3 + kw, ci],
                            preferred_element_type=jnp.float32)
                s = d if s is None else s + d
            parts.append(s.reshape(BH, Wp, cout_ch))
        y = (parts[0][:, PAD_L - 1:PAD_L - 1 + W, :]
             + parts[1][:, PAD_L:PAD_L + W, :]
             + parts[2][:, PAD_L + 1:PAD_L + 1 + W, :])
        y = y * scale_ref[0, o0:o0 + cout_ch] + bias_ref[0, o0:o0 + cout_ch]
        o_ref[0, :, :, o0:o0 + cout_ch] = jnp.maximum(y, 0.0).astype(o_ref.dtype)


def grouped_conv3x3_bn_relu(z1_img, w_taps, scale, bias, *, BH, Wp,
                            n_chunks, cin_ch, cout_ch):
    N, H, W, C0cp = z1_img.shape
    C1cp = n_chunks * cout_ch
    n_bands = H // BH
    kern = functools.partial(
        _grouped_conv3x3_kernel, BH=BH, H=H, W=W, Wp=Wp, n_bands=n_bands,
        n_chunks=n_chunks, cin_ch=cin_ch, cout_ch=cout_ch)
    return pl.pallas_call(
        kern,
        out_shape=jax.ShapeDtypeStruct((N, H, W, C1cp), jnp.bfloat16),
        grid_spec=pltpu.PrefetchScalarGridSpec(
            num_scalar_prefetch=0,
            grid=(N, n_bands),
            in_specs=[
                pl.BlockSpec(memory_space=pl.ANY),                        # z1 (raw HBM)
                pl.BlockSpec((9, n_chunks, cin_ch, cout_ch), lambda n, b: (0, 0, 0, 0)),
                pl.BlockSpec((1, C1cp), lambda n, b: (0, 0)),
                pl.BlockSpec((1, C1cp), lambda n, b: (0, 0)),
            ],
            out_specs=pl.BlockSpec((1, BH, W, C1cp), lambda n, b: (n, b, 0, 0)),
            scratch_shapes=[
                pltpu.VMEM((2, BH + 2, Wp, C0cp), jnp.bfloat16),          # band double buffer
                pltpu.SemaphoreType.DMA((3, 2)),                          # (interior/top/bot, slot)
            ],
        ),
        compiler_params=pltpu.CompilerParams(
            dimension_semantics=("parallel", "arbitrary"),
            vmem_limit_bytes=VMEM_LIMIT),
    )(z1_img, w_taps, scale, bias)


# ---------------------------------------------------------------------------
# K3: conv3 (1x1) + folded BN, with the SE global-average-pool fused into the epilogue.
#     2-D grid (N, steps_per_img) so the image axis can be megacore-sharded.
# ---------------------------------------------------------------------------
def _conv3_pool_kernel(x_ref, w_ref, scale_ref, bias_ref, z_ref, pool_ref, *, inv_hw):
    j = pl.program_id(1)
    y = jnp.dot(x_ref[0], w_ref[...], preferred_element_type=jnp.float32)
    y = y * scale_ref[...] + bias_ref[...]
    z_ref[0] = y.astype(z_ref.dtype)

    @pl.when(j == 0)
    def _():
        pool_ref[...] = jnp.zeros_like(pool_ref)

    pool_ref[...] += (jnp.sum(y, axis=0) * inv_hw)[None, None, :]


def conv3_bn_pool(z2_3d, w, scale, bias, *, tm):
    N, HW, C1cp = z2_3d.shape
    CoutP = w.shape[1]
    steps = HW // tm
    return pl.pallas_call(
        functools.partial(_conv3_pool_kernel, inv_hw=1.0 / HW),
        out_shape=(jax.ShapeDtypeStruct((N, HW, CoutP), jnp.bfloat16),
                   jax.ShapeDtypeStruct((N, 1, CoutP), jnp.float32)),
        grid_spec=pltpu.PrefetchScalarGridSpec(
            num_scalar_prefetch=0,
            grid=(N, steps),
            in_specs=[
                pl.BlockSpec((1, tm, C1cp), lambda n, j: (n, j, 0)),
                pl.BlockSpec((C1cp, CoutP), lambda n, j: (0, 0)),
                pl.BlockSpec((1, CoutP), lambda n, j: (0, 0)),
                pl.BlockSpec((1, CoutP), lambda n, j: (0, 0)),
            ],
            out_specs=(pl.BlockSpec((1, tm, CoutP), lambda n, j: (n, j, 0)),
                       pl.BlockSpec((1, 1, CoutP), lambda n, j: (n, 0, 0))),
        ),
        compiler_params=pltpu.CompilerParams(
            dimension_semantics=("parallel", "arbitrary"),
            vmem_limit_bytes=VMEM_LIMIT),
    )(z2_3d, w, scale, bias)


# ---------------------------------------------------------------------------
# K4: SE gate * z + residual + final ReLU (tiled streaming elementwise, bf16 output)
# ---------------------------------------------------------------------------
def _gate_res_kernel(z_ref, r_ref, g_ref, o_ref):
    y = z_ref[0].astype(jnp.float32) * g_ref[0] + r_ref[0].astype(jnp.float32)
    o_ref[0] = jnp.maximum(y, 0.0).astype(o_ref.dtype)


def gate_residual_relu(z3, r3, gate, *, tm):
    N, HW, CoutP = z3.shape
    steps = HW // tm
    return pl.pallas_call(
        _gate_res_kernel,
        out_shape=jax.ShapeDtypeStruct((N, HW, CoutP), jnp.bfloat16),
        grid_spec=pltpu.PrefetchScalarGridSpec(
            num_scalar_prefetch=0,
            grid=(N, steps),
            in_specs=[
                pl.BlockSpec((1, tm, CoutP), lambda n, j: (n, j, 0)),
                pl.BlockSpec((1, tm, CoutP), lambda n, j: (n, j, 0)),
                pl.BlockSpec((1, 1, CoutP), lambda n, j: (n, 0, 0)),
            ],
            out_specs=pl.BlockSpec((1, tm, CoutP), lambda n, j: (n, j, 0)),
        ),
        compiler_params=pltpu.CompilerParams(
            dimension_semantics=("parallel", "parallel"),
            vmem_limit_bytes=VMEM_LIMIT),
    )(z3, r3, gate)


# ---------------------------------------------------------------------------
# Parameter folding / packing (numpy, one-time setup cost)
# ---------------------------------------------------------------------------
def _fold_bn(bn, eps=1e-5):
    g = np.asarray(bn["gamma"], np.float32)
    b = np.asarray(bn["beta"], np.float32)
    m = np.asarray(bn["mean"], np.float32)
    v = np.asarray(bn["var"], np.float32)
    s = g / np.sqrt(v + eps)
    return s, b - m * s


def build_packed(params, *, group, is_shortcut):
    w1 = np.asarray(params["w1"], np.float32)[:, :, 0, 0]     # (C0, Cin)
    w2 = np.asarray(params["w2"], np.float32)                 # (C1, C0//g, 3, 3)
    w3 = np.asarray(params["w3"], np.float32)[:, :, 0, 0]     # (Cout, C1)
    C0, Cin = w1.shape
    C1 = w2.shape[0]
    Cout = w3.shape[0]
    C0g, C1g = C0 // group, C1 // group

    # pack groups into 128-lane channel chunks (block-diagonal only within a chunk)
    gpc = min(group, max(1, LANE // C0g))
    while group % gpc:
        gpc -= 1
    n_chunks = group // gpc
    cin_ch = _round_up(gpc * C0g, LANE)
    cout_ch = _round_up(gpc * C1g, LANE)
    C0cp = n_chunks * cin_ch
    C1cp = n_chunks * cout_ch
    CinP = _round_up(Cin, LANE)
    CoutP = _round_up(Cout, LANE)

    def chunk_pos(C, Cg, chunk_pad):
        c = np.arange(C)
        gidx = c // Cg
        return (gidx // gpc) * chunk_pad + (gidx % gpc) * Cg + (c % Cg)

    pos0 = chunk_pos(C0, C0g, cin_ch)
    pos1 = chunk_pos(C1, C1g, cout_ch)

    # --- conv1 (+ optional shortcut conv), fused into one weight matrix [r | z1]
    s1, b1 = _fold_bn(params["bn1"])
    w1p = np.zeros((CinP, C0cp), np.float32)
    w1p[:Cin, pos0] = w1.T
    s1p = np.zeros(C0cp, np.float32); s1p[pos0] = s1
    b1p = np.zeros(C0cp, np.float32); b1p[pos0] = b1
    if is_shortcut:
        wsc = np.asarray(params["w_sc"], np.float32)[:, :, 0, 0]
        ssc, bsc = _fold_bn(params["bn_sc"])
        wscp = np.zeros((CinP, CoutP), np.float32); wscp[:Cin, :Cout] = wsc.T
        sscp = np.zeros(CoutP, np.float32); sscp[:Cout] = ssc
        bscp = np.zeros(CoutP, np.float32); bscp[:Cout] = bsc
        w_cat = np.concatenate([wscp, w1p], axis=1)
        s_cat = np.concatenate([sscp, s1p])
        b_cat = np.concatenate([bscp, b1p])
        n_sc = CoutP
    else:
        w_cat, s_cat, b_cat, n_sc = w1p, s1p, b1p, 0

    # --- grouped 3x3 conv, chunked block-diagonal per-tap weights
    s2, b2 = _fold_bn(params["bn2"])
    taps = np.zeros((9, n_chunks, cin_ch, cout_ch), np.float32)
    for g_ in range(group):
        ci, gl = divmod(g_, gpc)
        wg = w2[g_ * C1g:(g_ + 1) * C1g]                          # (C1g, C0g, 3, 3)
        wg = np.transpose(wg, (2, 3, 1, 0)).reshape(9, C0g, C1g)  # (kh*3+kw, C0g, C1g)
        taps[:, ci, gl * C0g:(gl + 1) * C0g, gl * C1g:(gl + 1) * C1g] = wg
    s2p = np.zeros(C1cp, np.float32); s2p[pos1] = s2
    b2p = np.zeros(C1cp, np.float32); b2p[pos1] = b2

    # --- conv3 1x1
    s3, b3 = _fold_bn(params["bn3"])
    w3p = np.zeros((C1cp, CoutP), np.float32)
    w3p[pos1, :Cout] = w3.T
    s3p = np.zeros(CoutP, np.float32); s3p[:Cout] = s3
    b3p = np.zeros(CoutP, np.float32); b3p[:Cout] = b3

    return dict(
        w_cat=jnp.asarray(w_cat, jnp.bfloat16),
        s_cat=jnp.asarray(s_cat.reshape(1, -1)),
        b_cat=jnp.asarray(b_cat.reshape(1, -1)),
        w2_taps=jnp.asarray(taps, jnp.bfloat16),
        s2=jnp.asarray(s2p.reshape(1, -1)),
        b2=jnp.asarray(b2p.reshape(1, -1)),
        w3=jnp.asarray(w3p, jnp.bfloat16),
        s3=jnp.asarray(s3p.reshape(1, -1)),
        b3=jnp.asarray(b3p.reshape(1, -1)),
        fc1_w=jnp.asarray(np.asarray(params["fc1_w"], np.float32)[:, :, 0, 0]),
        fc1_b=jnp.asarray(np.asarray(params["fc1_b"], np.float32)),
        fc2_w=jnp.asarray(np.asarray(params["fc2_w"], np.float32)[:, :, 0, 0]),
        fc2_b=jnp.asarray(np.asarray(params["fc2_b"], np.float32)),
        dims=dict(Cin=Cin, CinP=CinP, C0cp=C0cp, C1cp=C1cp, Cout=Cout, CoutP=CoutP,
                  n_chunks=n_chunks, cin_ch=cin_ch, cout_ch=cout_ch, n_sc=n_sc,
                  is_shortcut=bool(is_shortcut)),
    )


def _compute_gate(pooled, fc1_w, fc1_b, fc2_w, fc2_b, cout, coutp):
    # Tiny (N, C) matmuls: evaluated with plain jnp (negligible cost).
    p = pooled[:, 0, :cout]
    s = jnp.maximum(p @ fc1_w.T + fc1_b, 0.0)
    g = jax.nn.sigmoid(s @ fc2_w.T + fc2_b)
    g = jnp.pad(g, ((0, 0), (0, coutp - cout)))
    return g[:, None, :]                                          # (N, 1, CoutP)


# ---------------------------------------------------------------------------
# Full block forward (NHWC)
# ---------------------------------------------------------------------------
def senext_bottleneck_nhwc(x_nhwc, packed, *, stride=1, max_bh=None):
    # TODO(synk): stride=2 max/avg pooling path not implemented (stride=1 path only).
    assert stride == 1
    d = packed["dims"]
    N, H, W, Cin = x_nhwc.shape
    assert Cin == d["Cin"]
    HW = H * W
    CinP, C0cp, C1cp, CoutP, Cout = d["CinP"], d["C0cp"], d["C1cp"], d["CoutP"], d["Cout"]

    x3 = jnp.pad(x_nhwc, ((0, 0), (0, 0), (0, 0), (0, CinP - Cin)))
    x3 = x3.astype(jnp.bfloat16).reshape(N, HW, CinP)

    ctot = packed["w_cat"].shape[1]
    tm1 = _pick_rows(HW, 4 * CinP + 8 * ctot, TILE_BUDGET)

    # K1: fused [shortcut | conv1] 1x1 matmul (+BN); two lane-dense outputs
    if d["is_shortcut"]:
        r3, z1 = conv1_fused(x3, packed["w_cat"], packed["s_cat"], packed["b_cat"],
                             n_sc=d["n_sc"], tm=tm1)
    else:
        assert Cin == Cout, "identity shortcut requires in_channel == out_channel"
        z1 = conv1_fused(x3, packed["w_cat"], packed["s_cat"], packed["b_cat"],
                         n_sc=0, tm=tm1)
        r3 = x3                      # reuse the already-padded bf16 input (CinP == CoutP)

    # K2: grouped 3x3 conv + BN + ReLU, row bands DMA'd straight from z1 in HBM
    Wp = _round_up(PAD_L + W + 1, 8)
    BH = _pick_bh(H, W, Wp, C0cp, C1cp, d["n_chunks"], d["cin_ch"], d["cout_ch"],
                  BH_BUDGET, max_bh=max_bh)
    z2 = grouped_conv3x3_bn_relu(z1.reshape(N, H, W, C0cp), packed["w2_taps"],
                                 packed["s2"], packed["b2"],
                                 BH=BH, Wp=Wp, n_chunks=d["n_chunks"],
                                 cin_ch=d["cin_ch"], cout_ch=d["cout_ch"])

    # K3: conv3 1x1 + BN with fused global-average-pool epilogue (2-D megacore grid)
    tm3 = _pick_rows(HW, 4 * C1cp + 8 * CoutP, TILE_BUDGET)
    z3, pooled = conv3_bn_pool(z2.reshape(N, HW, C1cp), packed["w3"],
                               packed["s3"], packed["b3"], tm=tm3)

    gate = _compute_gate(pooled, packed["fc1_w"], packed["fc1_b"],
                         packed["fc2_w"], packed["fc2_b"], Cout, CoutP)

    # K4: z * gate + residual, final ReLU (bf16 out)
    tm4 = _pick_rows(HW, 12 * CoutP, TILE_BUDGET)
    out3 = gate_residual_relu(z3, r3, gate, tm=tm4)
    return out3.reshape(N, H, W, CoutP)[..., :Cout]


# ---------------------------------------------------------------------------
# Random params + pure-JAX reference (mirrors the PyTorch forward, eval-mode BN)
# ---------------------------------------------------------------------------
def init_params(key, in_channel, channel, out_channel, group, reduction):
    c0, c1 = channel
    hid = out_channel // reduction
    ks = jax.random.split(key, 12)

    def bn(k, c):
        k1, k2, k3, k4 = jax.random.split(k, 4)
        return dict(gamma=1.0 + 0.1 * jax.random.normal(k1, (c,), jnp.float32),
                    beta=0.1 * jax.random.normal(k2, (c,), jnp.float32),
                    mean=0.1 * jax.random.normal(k3, (c,), jnp.float32),
                    var=1.0 + 0.1 * jax.random.uniform(k4, (c,), jnp.float32))

    return dict(
        w1=0.1 * jax.random.normal(ks[0], (c0, in_channel, 1, 1), jnp.float32),
        bn1=bn(ks[1], c0),
        w2=0.1 * jax.random.normal(ks[2], (c1, c0 // group, 3, 3), jnp.float32),
        bn2=bn(ks[3], c1),
        w3=0.1 * jax.random.normal(ks[4], (out_channel, c1, 1, 1), jnp.float32),
        bn3=bn(ks[5], out_channel),
        fc1_w=0.1 * jax.random.normal(ks[6], (hid, out_channel, 1, 1), jnp.float32),
        fc1_b=0.1 * jax.random.normal(ks[7], (hid,), jnp.float32),
        fc2_w=0.1 * jax.random.normal(ks[8], (out_channel, hid, 1, 1), jnp.float32),
        fc2_b=0.1 * jax.random.normal(ks[9], (out_channel,), jnp.float32),
        w_sc=0.1 * jax.random.normal(ks[10], (out_channel, in_channel, 1, 1), jnp.float32),
        bn_sc=bn(ks[11], out_channel),
    )


def reference_forward(x, p, *, group, is_shortcut, eps=1e-5):
    def conv(x, w, groups=1, padding=0):
        return jax.lax.conv_general_dilated(
            x, jnp.transpose(w, (2, 3, 1, 0)),
            window_strides=(1, 1),
            padding=[(padding, padding), (padding, padding)],
            dimension_numbers=("NCHW", "HWIO", "NCHW"),
            feature_group_count=groups)

    def bn(y, pbn):
        g, b, m, v = pbn["gamma"], pbn["beta"], pbn["mean"], pbn["var"]
        return ((y - m[None, :, None, None]) / jnp.sqrt(v + eps)[None, :, None, None]
                * g[None, :, None, None] + b[None, :, None, None])

    z = jax.nn.relu(bn(conv(x, p["w1"]), p["bn1"]))
    z = jax.nn.relu(bn(conv(z, p["w2"], groups=group, padding=1), p["bn2"]))
    z = bn(conv(z, p["w3"]), p["bn3"])
    s = jnp.mean(z, axis=(2, 3), keepdims=True)
    s = jax.nn.relu(conv(s, p["fc1_w"]) + p["fc1_b"][None, :, None, None])
    s = jax.nn.sigmoid(conv(s, p["fc2_w"]) + p["fc2_b"][None, :, None, None])
    z = z * s
    if is_shortcut:
        x = bn(conv(x, p["w_sc"]), p["bn_sc"])
    return jax.nn.relu(z + x)


if __name__ == "__main__":
    def run_case(key, *, N, CIN, CHANNEL, COUT, GROUP, REDUCTION, H, W,
                 is_shortcut, max_bh=None):
        kx, kp = jax.random.split(key)
        x_nchw = jax.random.normal(kx, (N, CIN, H, W), jnp.float32)
        params = init_params(kp, CIN, CHANNEL, COUT, GROUP, REDUCTION)
        packed = build_packed(params, group=GROUP, is_shortcut=is_shortcut)

        # the Pallas pipeline runs in NHWC; transposes only at the test-harness boundary
        x_nhwc = jnp.transpose(x_nchw, (0, 2, 3, 1))
        out_nhwc = senext_bottleneck_nhwc(x_nhwc, packed, stride=1, max_bh=max_bh)
        out = jax.block_until_ready(
            jnp.transpose(out_nhwc, (0, 3, 1, 2)).astype(jnp.float32))

        ref = jax.block_until_ready(
            reference_forward(x_nchw, params, group=GROUP, is_shortcut=is_shortcut))

        assert out.shape == (N, COUT, H, W), out.shape
        max_err = float(jnp.max(jnp.abs(out - ref)))
        assert max_err < 5e-2, f"mismatch vs reference (bf16 pipeline): {max_err}"
        return max_err

    key = jax.random.PRNGKey(0)
    k1, k2 = jax.random.split(key)

    # SENextBottleneck(16, (16,16), 32, group=4, reduction=4, stride=1, is_shortcut=True)
    run_case(k1, N=2, CIN=16, CHANNEL=(16, 16), COUT=32, GROUP=4, REDUCTION=4,
             H=16, W=16, is_shortcut=True)
    # identity-shortcut variant, small band height to exercise the multi-band halo DMAs
    run_case(k2, N=2, CIN=32, CHANNEL=(16, 16), COUT=32, GROUP=4, REDUCTION=4,
             H=16, W=16, is_shortcut=False, max_bh=4)

    print("KERNEL_OK")
</pallas_src>

<mosaic_0001>
module attributes {stable_mosaic.version = 11 : i64} {
  func.func @_conv1_sc_kernel(%arg0: i32, %arg1: i32, %arg2: memref<1x256x128xbf16, #tpu.memory_space<vmem>>, %arg3: memref<128x256xbf16, #tpu.memory_space<vmem>>, %arg4: memref<1x256xf32, #tpu.memory_space<vmem>>, %arg5: memref<1x256xf32, #tpu.memory_space<vmem>>, %arg6: memref<1x256x128xbf16, #tpu.memory_space<vmem>>, %arg7: memref<1x256x128xbf16, #tpu.memory_space<vmem>>) attributes {dimension_semantics = [#tpu.dimension_semantics<parallel>, #tpu.dimension_semantics<parallel>], iteration_bounds = array<i64: 2, 1>, scalar_prefetch = 0 : i64, scratch_operands = 0 : i64, tpu.core_type = #tpu.core_type<tc>, window_params = [{transform_indices = @transform_0, window_bounds = array<i64: 1, 256, 128>}, {pipeline_mode = #tpu.pipeline_mode<synchronous>, transform_indices = @transform_1, window_bounds = array<i64: 128, 256>}, {pipeline_mode = #tpu.pipeline_mode<synchronous>, transform_indices = @transform_2, window_bounds = array<i64: 1, 256>}, {pipeline_mode = #tpu.pipeline_mode<synchronous>, transform_indices = @transform_3, window_bounds = array<i64: 1, 256>}, {transform_indices = @transform_4, window_bounds = array<i64: 1, 256, 128>}, {transform_indices = @transform_5, window_bounds = array<i64: 1, 256, 128>}]} {
    %c0 = arith.constant 0 : index
    %c0_0 = arith.constant 0 : index
    %c0_1 = arith.constant 0 : index
    %0 = vector.load %arg2[%c0, %c0_0, %c0_1] : memref<1x256x128xbf16, #tpu.memory_space<vmem>>, vector<1x256x128xbf16>
    %1 = vector.shape_cast %0 : vector<1x256x128xbf16> to vector<256x128xbf16>
    %c0_2 = arith.constant 0 : index
    %c0_3 = arith.constant 0 : index
    %2 = vector.load %arg3[%c0_2, %c0_3] : memref<128x256xbf16, #tpu.memory_space<vmem>>, vector<128x256xbf16>
    %cst = arith.constant dense<0.000000e+00> : vector<256x256xf32>
    %3 = tpu.matmul %1, %2, %cst {dimension_numbers = #tpu.dot_dimension_numbers<[1], [0], [0], [1], [0, 0, 1, 1], [], []>} : vector<256x128xbf16>, vector<128x256xbf16>, vector<256x256xf32> -> vector<256x256xf32>
    %c0_4 = arith.constant 0 : index
    %c0_5 = arith.constant 0 : index
    %4 = vector.load %arg4[%c0_4, %c0_5] : memref<1x256xf32, #tpu.memory_space<vmem>>, vector<1x256xf32>
    %5 = vector.broadcast %4 : vector<1x256xf32> to vector<256x256xf32>
    %6 = arith.mulf %3, %5 : vector<256x256xf32>
    %c0_6 = arith.constant 0 : index
    %c0_7 = arith.constant 0 : index
    %7 = vector.load %arg5[%c0_6, %c0_7] : memref<1x256xf32, #tpu.memory_space<vmem>>, vector<1x256xf32>
    %8 = vector.broadcast %7 : vector<1x256xf32> to vector<256x256xf32>
    %9 = arith.addf %6, %8 : vector<256x256xf32>
    %10 = vector.extract_strided_slice %9 {offsets = [0, 0], sizes = [256, 128], strides = [1, 1]} : vector<256x256xf32> to vector<256x128xf32>
    %11 = arith.truncf %10 : vector<256x128xf32> to vector<256x128xbf16>
    %c0_8 = arith.constant 0 : index
    %c0_9 = arith.constant 0 : index
    %c0_10 = arith.constant 0 : index
    %12 = vector.load %arg6[%c0_8, %c0_9, %c0_10] : memref<1x256x128xbf16, #tpu.memory_space<vmem>>, vector<1x256x128xbf16>
    %13 = vector.shape_cast %12 : vector<1x256x128xbf16> to vector<256x128xbf16>
    %14 = vector.shape_cast %11 : vector<256x128xbf16> to vector<1x256x128xbf16>
    tpu.vector_store %arg6[%c0_8, %c0_9, %c0_10], %14 {strides = array<i32>} : memref<1x256x128xbf16, #tpu.memory_space<vmem>>, vector<1x256x128xbf16>,
    %15 = vector.extract_strided_slice %9 {offsets = [0, 128], sizes = [256, 128], strides = [1, 1]} : vector<256x256xf32> to vector<256x128xf32>
    %cst_11 = arith.constant 0.000000e+00 : f32
    %16 = vector.broadcast %cst_11 : f32 to vector<256x128xf32>
    %17 = arith.maximumf %15, %16 : vector<256x128xf32>
    %18 = arith.truncf %17 : vector<256x128xf32> to vector<256x128xbf16>
    %c0_12 = arith.constant 0 : index
    %c0_13 = arith.constant 0 : index
    %c0_14 = arith.constant 0 : index
    %19 = vector.load %arg7[%c0_12, %c0_13, %c0_14] : memref<1x256x128xbf16, #tpu.memory_space<vmem>>, vector<1x256x128xbf16>
    %20 = vector.shape_cast %19 : vector<1x256x128xbf16> to vector<256x128xbf16>
    %21 = vector.shape_cast %18 : vector<256x128xbf16> to vector<1x256x128xbf16>
    tpu.vector_store %arg7[%c0_12, %c0_13, %c0_14], %21 {strides = array<i32>} : memref<1x256x128xbf16, #tpu.memory_space<vmem>>, vector<1x256x128xbf16>,
    return
  }
  func.func @transform_0(%arg0: i32, %arg1: i32) -> (i32, i32, i32) {
    %c0_i32 = arith.constant 0 : i32
    %c0_i32_0 = arith.constant 0 : i32
    return %arg0, %arg1, %c0_i32 : i32, i32, i32
  }
  func.func @transform_1(%arg0: i32, %arg1: i32) -> (i32, i32) {
    %c0_i32 = arith.constant 0 : i32
    %c0_i32_0 = arith.constant 0 : i32
    %c0_i32_1 = arith.constant 0 : i32
    return %c0_i32, %c0_i32_0 : i32, i32
  }
  func.func @transform_2(%arg0: i32, %arg1: i32) -> (i32, i32) {
    %c0_i32 = arith.constant 0 : i32
    %c0_i32_0 = arith.constant 0 : i32
    %c0_i32_1 = arith.constant 0 : i32
    return %c0_i32, %c0_i32_0 : i32, i32
  }
  func.func @transform_3(%arg0: i32, %arg1: i32) -> (i32, i32) {
    %c0_i32 = arith.constant 0 : i32
    %c0_i32_0 = arith.constant 0 : i32
    %c0_i32_1 = arith.constant 0 : i32
    return %c0_i32, %c0_i32_0 : i32, i32
  }
  func.func @transform_4(%arg0: i32, %arg1: i32) -> (i32, i32, i32) {
    %c0_i32 = arith.constant 0 : i32
    %c0_i32_0 = arith.constant 0 : i32
    return %arg0, %arg1, %c0_i32 : i32, i32, i32
  }
  func.func @transform_5(%arg0: i32, %arg1: i32) -> (i32, i32, i32) {
    %c0_i32 = arith.constant 0 : i32
    %c0_i32_0 = arith.constant 0 : i32
    return %arg0, %arg1, %c0_i32 : i32, i32, i32
  }
}

</mosaic_0001>

<bundles_post_ra>
// kernel: tpu_custom_call.1
= control target key start
LH: loop header
LB: loop body
LE: loop exit
PB: predicated region body
PF: predicated region fallthrough
CT: control target
= control target key end

     0   :  { %s2312_s0 = inlined_call_operand.hbm [shape: bf16[2,256,128], index: 0, kind: input, shape index: {}]   ;;  %s2313_s1 = inlined_call_operand.hbm [shape: bf16[128,256], index: 1, kind: input, shape index: {}]   ;;  %s2314_s2 = inlined_call_operand.hbm [shape: f32[1,256], index: 2, kind: input, shape index: {}]   ;;  %s2315_s3 = inlined_call_operand.vmem [shape: f32[1,256], index: 3, kind: input, shape index: {}]   ;;  %s2316_s4 = inlined_call_operand.hbm [shape: bf16[2,256,128], index: 4, kind: output, shape index: {0}]   ;;  %s2317_s5 = inlined_call_operand.hbm [shape: bf16[2,256,128], index: 5, kind: output, shape index: {1}]  }
   0x1   :  { %2319 = sst [smem:[#allocation16_spill]] %s2313_s1 }
   0x2   :  { %2320 = sst [smem:[#allocation17_spill]] %s2314_s2 }
   0x3   :  { %11 = vsyncpa [#allocation3], 0 }
   0x4   :  { %13 = vsyncpa [#allocation3 + $0x1], 0 }
   0x5   :  { %14 = vsyncpa [#allocation6], 0 }
   0x6   :  { %15 = vsyncpa [#allocation4], 0 }
   0x7   :  { %17 = vsyncpa [#allocation4 + $0x1], 0 }
   0x8   :  { %18 = vsyncpa [#allocation10], 0 }
   0x9   :  { %20 = vsyncpa [#allocation10 + $0x1], 0  ;;  %s1930_s18 = smov 0   ;;  %s1932_s19 = smov 0  }
   0xa   :  { %s1934_s20 = smov 0   ;;  %s1936_s21 = smov 0  }
   0xb   :  { %s1938_s22 = smov 0   ;;  %s1940_s23 = smov 0  }
   0xc LB: > { %s1196_s24 = sadd.s32 4294967295, %s1890_s23   ;;  %s1197_s25 = sadd.s32 4294967294, %s1890_s23   ;;  %s1890_s23 = sphi %s1940_s23, %s26_s23   ;;  %s1886_s22 = sphi %s1938_s22, %s2336_s22   ;;  %s1882_s21 = sphi %s1936_s21, %s2335_s21   ;;  %s1878_s20 = sphi %s1934_s20, %s2334_s20   ;;  %s1874_s19 = sphi %s1932_s19, %s2333_s19   ;;  %s1870_s18 = sphi %s1930_s18, %s2332_s18  }
   0xd   : > { %p60_p0 = scmp.ne.s32.totalorder %s1874_s19, %s1870_s18  ;;  %p1964_p1 = scmp.eq.s32.totalorder %s1196_s24, 0 }
   0xe   : > { %p1968_p2 = scmp.eq.s32.totalorder %s1196_s24, 1  ;;  %p155_p3 = scmp.eq.s32.totalorder %s1197_s25, 1 }
   0xf   : > { %p1974_p4 = por %p1964_p1, %p60_p0  ;;  %p1198_p5 = scmp.ge.s32.totalorder %s1890_s23, 1 }
  0x10   : > { %p1979_p6 = por %p155_p3, %p60_p0  ;;  %p190_p7 = scmp.lt.s32.totalorder %s1890_s23, 3 }
  0x11   : > { %s2325_s1 = sld [smem:[#allocation16_spill]]  ;;  %s1892_s9 = smov [#allocation5]  }
  0x12   : > { %p1987_p8 = pnand %p1198_p5, %p190_p7  ;;  %s203_s10 = sshll.u32 %s1892_s9, 4  ;;  %s204_s10 = int_to_ptr.vmem [resolvable:$true] %s203_s10 }
  0x13   : > { %p1201_p11 = scmp.ge.s32.totalorder %s1890_s23, 2  ;;  %s2327_s2 = sld [smem:[#allocation17_spill]] }
  0x14   : > { %p1602_p9 = pneg %p1987_p8  ;;  %s1893_s14 = smov 128  }
  0x15   : > { %s1894_s15 = smov 8   ;;  %s1895_s16 = smov [#allocation7]  }
  0x16   : > { %p1603_p10 = pnand %p1602_p9, %p1964_p1  ;;  %s218_s17 = sshll.u32 %s1895_s16, 4  ;;  %s219_s17 = int_to_ptr.vmem [resolvable:$true] %s218_s17 }
  0x17   : > { %s201_s7 = sshll.u32 %s2325_s1, 4  ;;  %s38_s24 = sadd.s32 1, %s1886_s22  ;;  %s202_s7 = int_to_ptr.hbm [resolvable:$true] %s201_s7 }
  0x18   : > { %1605 = dma.hbm_to_vmem [thread:$0]  (!%p1603_p10), %s202_s7, 2048, %s204_s10, [#allocation6], %s1893_s14, %s1893_s14, %s1894_s15  }
  0x19   : > { %s216_s13 = sshll.u32 %s2327_s2, 4  ;;  %s47_s25 = sadd.s32 1, %s1878_s20  ;;  %s217_s13 = int_to_ptr.hbm [resolvable:$true] %s216_s13 }
  0x1a   : > { %1608 = dma.hbm_to_vmem [thread:$0]  (!%p1603_p10), %s217_s13, 32, %s219_s17, [#allocation6]  }
  0x1b   : > { %p40_p12 = scmp.ge.s32.totalorder %s38_s24, 2  ;;  %p54_p13 = scmp.ne.s32.totalorder %s1878_s20, %s1874_s19 }
  0x1c   : > { %p55_p0 = scmp.eq.s32.totalorder %s1890_s23, 0  ;;  %p1622_p3 = scmp.lt.s32.totalorder %s1890_s23, 2 }
  0x1d   : > { %s2338_s24 = smov (%p40_p12, %s38_s24), 0  ;;  %p2013_p7 = por %p1968_p2, %p54_p13 }
  0x1e   : > { %2328 = sst [smem:[#allocation15_spill]] %s2338_s24  ;;  %p2007_p5 = por %p55_p0, %p54_p13 }
  0x1f   : > { %s42_s7 = ssub.s32 %s1886_s22, %s2338_s24  ;;  %s232_s9 = sand.u32 1, %s1878_s20  }
  0x20   : > { %p45_p9 = scmp.eq.s32.totalorder %s42_s7, 0  ;;  %s1202_s10 = sshll.u32 %s232_s9, 7 }
  0x21   : > { %s1347_s11 = sshll.u32 %s1886_s22, 7  ;;  %s236_s17 = scalar_lea.vmem [#allocation2], %s1202_s10 }
  0x22   : > { %s2022_s12 = scalar_select %p45_p9, %s1878_s20, %s47_s25  }
  0x23   : > { %s243_s15 = scalar_lea.hbm %s2312_s0, %s1347_s11  ;;  %s246_s1 = sshll.u32 %s236_s17, 4  ;;  %s247_s1 = int_to_ptr.vmem [resolvable:$true] %s246_s1 }
  0x24   : > { %s244_s16 = sshll.u32 %s243_s15, 4  ;;  %p1610_p2 = pnand %p1622_p3, %p2007_p5  ;;  %s245_s16 = int_to_ptr.hbm [resolvable:$true] %s244_s16 }
  0x25   : > { %s233_s27 = scalar_lea.sflag [#allocation3], %s232_s9  ;;  %s1896_s2 = smov 64  }
  0x26   : > { %s1897_s24 = smov 4   ;;  %258 = sbr.rel (%p1987_p8) target bundleno = 355 (0x163), region = 36 }
  0x27   : > { %1612 = dma.hbm_to_vmem [thread:$0]  (!%p1610_p2), %s245_s16, 2048, %s247_s1, %s233_s27, %s1896_s2, %s1896_s2, %s1897_s24  }
  0x28   : > { %s2034_s25 = sand.u32 (!%p1987_p8), 1, %s1874_s19  }
  0x29   : > { %s2037_s7 = sshll.u32 (!%p1987_p8), %s2034_s25, 7  ;;  %s261_s10 = scalar_lea.sflag (!%p1987_p8), [#allocation3], %s2034_s25 }
  0x2a   : > { %s2041_s30 = scalar_lea.vmem (!%p1987_p8), [#allocation2], %s2037_s7 }
  0x2b   : > { %1853 = dma.done.wait (%p1974_p4), %s261_s10, 2048  }
  0x2c   : > { %1855 = vsyncadd (%p1974_p4), %s261_s10, 4294965248 }
  0x2d   : > { %1857 = dma.done.wait (%p1964_p1), [#allocation6], 2080  }
  0x2e   : > { %1859 = vsyncadd (%p1964_p1), [#allocation6], 4294965216  ;;  %v1333_v0 = vld [vmem:[#allocation5 + $0x70] sm:$0xf]  ;;  %v1379_v1 = vld [vmem:[#allocation5 + $0x74] sm:$0xf0] }
  0x2f   : > { %v1378_v2 = vld [vmem:[#allocation5 + $0x74] sm:$0xf]  ;;  %v1334_v3 = vor.u32 %v1379_v1, %v1333_v0  ;;  %v1335_v4 = vld [vmem:[#allocation5 + $0x78] sm:$0xf0]  ;;  %v1325_v5 = vld [vmem:[#allocation5 + $0x60] sm:$0xf] }
  0x30   : > { %v1377_v6 = vld [vmem:[#allocation5 + $0x64] sm:$0xf0]  ;;  %v1338_v7 = vor.u32 %v1378_v2, %v1335_v4  ;;  %v1376_v8 = vld [vmem:[#allocation5 + $0x64] sm:$0xf]  ;;  %v1327_v9 = vld [vmem:[#allocation5 + $0x68] sm:$0xf0] }
  0x31   : > { %534 = vmatpush.bf16.msra.mxu0 %v1334_v3  ;;  %1572 = vmatpush.bf16.msra.mxu2 %v1334_v3  ;;  %v1326_v10 = vor.u32 %v1377_v6, %v1325_v5  ;;  %v1330_v11 = vor.u32 %v1376_v8, %v1327_v9  ;;  %v1317_v12 = vld [vmem:[#allocation5 + $0x50] sm:$0xf]  ;;  %v1375_v13 = vld [vmem:[#allocation5 + $0x54] sm:$0xf0]  ;;  %v1374_v14 = vld [vmem:[#allocation5 + $0x54] sm:$0xf] }
  0x32   : > { %623 = vmatpush.bf16.msra.mxu1 %v1338_v7  ;;  %1580 = vmatpush.bf16.msra.mxu3 %v1338_v7  ;;  %v1319_v15 = vld [vmem:[#allocation5 + $0x58] sm:$0xf0]  ;;  %v1318_v16 = vor.u32 %v1375_v13, %v1317_v12  ;;  %v1309_v18 = vld [vmem:[#allocation5 + $0x40] sm:$0xf]  ;;  %v1373_v19 = vld [vmem:[#allocation5 + $0x44] sm:$0xf0] }
  0x33   : > { %v1322_v17 = vor.u32 %v1374_v14, %v1319_v15  ;;  %v1372_v20 = vld [vmem:[#allocation5 + $0x44] sm:$0xf]  ;;  %v1311_v21 = vld [vmem:[#allocation5 + $0x48] sm:$0xf0]  ;;  %v1310_v22 = vor.u32 %v1373_v19, %v1309_v18  ;;  %v1301_v24 = vld [vmem:[#allocation5 + $0x30] sm:$0xf] }
  0x34   : > { %v1314_v23 = vor.u32 %v1372_v20, %v1311_v21  ;;  %v1371_v25 = vld [vmem:[#allocation5 + $0x34] sm:$0xf0]  ;;  %v1370_v26 = vld [vmem:[#allocation5 + $0x34] sm:$0xf]  ;;  %v1303_v27 = vld [vmem:[#allocation5 + $0x38] sm:$0xf0] }
  0x35   : > { %535 = vmatpush.bf16.msra.mxu0 %v1326_v10  ;;  %1573 = vmatpush.bf16.msra.mxu2 %v1326_v10  ;;  %v1302_v28 = vor.u32 %v1371_v25, %v1301_v24  ;;  %v1306_v29 = vor.u32 %v1370_v26, %v1303_v27  ;;  %v1293_v30 = vld [vmem:[#allocation5 + $0x20] sm:$0xf]  ;;  %v1369_v31 = vld [vmem:[#allocation5 + $0x24] sm:$0xf0]  ;;  %v1368_v32 = vld [vmem:[#allocation5 + $0x24] sm:$0xf] }
  0x36   : > { %624 = vmatpush.bf16.msra.mxu1 %v1330_v11  ;;  %1581 = vmatpush.bf16.msra.mxu3 %v1330_v11  ;;  %v1295_v33 = vld [vmem:[#allocation5 + $0x28] sm:$0xf0]  ;;  %v1294_v34 = vor.u32 %v1369_v31, %v1293_v30  ;;  %v1285_v36 = vld [vmem:[#allocation5 + $0x10] sm:$0xf]  ;;  %v1367_v37 = vld [vmem:[#allocation5 + $0x14] sm:$0xf0] }
  0x37   : > { %v1298_v35 = vor.u32 %v1368_v32, %v1295_v33  ;;  %v1366_v38 = vld [vmem:[#allocation5 + $0x14] sm:$0xf]  ;;  %v1287_v39 = vld [vmem:[#allocation5 + $0x18] sm:$0xf0]  ;;  %v1286_v40 = vor.u32 %v1367_v37, %v1285_v36  ;;  %v1277_v42 = vld [vmem:[#allocation5] sm:$0xf] }
  0x38   : > { %v1290_v41 = vor.u32 %v1366_v38, %v1287_v39  ;;  %v1365_v43 = vld [vmem:[#allocation5 + $0x4] sm:$0xf0]  ;;  %v1364_v44 = vld [vmem:[#allocation5 + $0x4] sm:$0xf]  ;;  %v1279_v45 = vld [vmem:[#allocation5 + $0x8] sm:$0xf0] }
  0x39   : > { %536 = vmatpush.bf16.msra.mxu0 %v1318_v16  ;;  %1574 = vmatpush.bf16.msra.mxu2 %v1318_v16  ;;  %v1278_v46 = vor.u32 %v1365_v43, %v1277_v42  ;;  %v1282_v47 = vor.u32 %v1364_v44, %v1279_v45  ;;  %v1348_v48 = vld [vmem:[%s2041_s30] sm:$0xff]  ;;  %v1349_v50 = vld [vmem:[%s2041_s30 + $0x8] sm:$0xff]  ;;  %v1350_v52 = vld [vmem:[%s2041_s30 + $0x10] sm:$0xff]  ;;  %s2089_s26 = scalar_lea.vmem [#allocation8], %s2037_s7  ;;  %s2098_s28 = scalar_lea.vmem [#allocation9], %s2037_s7 }
  0x3a   : > { %625 = vmatpush.bf16.msra.mxu1 %v1322_v17  ;;  %1582 = vmatpush.bf16.msra.mxu3 %v1322_v17  ;;  %v1356_v49 = vld [vmem:[%s2041_s30 + $0x40] sm:$0xff]  ;;  %v1357_v51 = vld [vmem:[%s2041_s30 + $0x48] sm:$0xff]  ;;  %v1358_v53 = vld [vmem:[%s2041_s30 + $0x50] sm:$0xff]  ;;  %s1380_s8 = sshll.u32 %s1882_s21, 7  ;;  %s1032_s21 = sshll.u32 %s2089_s26, 4  ;;  %s2248_s21 = int_to_ptr.vmem [resolvable:$true] %s1032_s21 }
  0x3b   : > { %v1351_v54 = vld [vmem:[%s2041_s30 + $0x18] sm:$0xff]  ;;  %v1352_v56 = vld [vmem:[%s2041_s30 + $0x20] sm:$0xff]  ;;  %v1353_v58 = vld [vmem:[%s2041_s30 + $0x28] sm:$0xff]  ;;  %s1031_s11 = scalar_lea.hbm %s2316_s4, %s1380_s8  ;;  %s1050_s16 = scalar_lea.hbm %s2317_s5, %s1380_s8 }
  0x3c   : > { %v1359_v55 = vld [vmem:[%s2041_s30 + $0x58] sm:$0xff]  ;;  %v1360_v57 = vld [vmem:[%s2041_s30 + $0x60] sm:$0xff]  ;;  %v1361_v59 = vld [vmem:[%s2041_s30 + $0x68] sm:$0xff]  ;;  %s1034_s13 = sshll.u32 %s1031_s11, 4  ;;  %s1051_s17 = sshll.u32 %s2098_s28, 4  ;;  %s2250_s13 = int_to_ptr.hbm [resolvable:$true] %s1034_s13  ;;  %s2256_s17 = int_to_ptr.vmem [resolvable:$true] %s1051_s17 }
  0x3d   : > { %537 = vmatpush.bf16.msra.mxu0 %v1310_v22  ;;  %1575 = vmatpush.bf16.msra.mxu2 %v1310_v22  ;;  %v1354_v60 = vld [vmem:[%s2041_s30 + $0x30] sm:$0xff]  ;;  %v1355_v62 = vld [vmem:[%s2041_s30 + $0x38] sm:$0xff]  ;;  %v712_v0 = vld [vmem:[#allocation7] sm:$0x3]  ;;  %s1053_s27 = sshll.u32 %s1050_s16, 4  ;;  %s1013_s7 = scalar_lea.sflag [#allocation4], %s2034_s25  ;;  %s2258_s27 = int_to_ptr.hbm [resolvable:$true] %s1053_s27 }
  0x3e   : > { %626 = vmatpush.bf16.msra.mxu1 %v1314_v23  ;;  %1583 = vmatpush.bf16.msra.mxu3 %v1314_v23  ;;  %v1362_v61 = vld [vmem:[%s2041_s30 + $0x70] sm:$0xff]  ;;  %v1363_v63 = vld [vmem:[%s2041_s30 + $0x78] sm:$0xff]  ;;  %v2067_v2 = vperm.slane %v712_v0, 0  ;;  %v2069_v4 = vperm.slane %v712_v0, 1  ;;  %v782_v5 = vld [vmem:[%s2315_s3] sm:$0x3] }
  0x3f   : > { %v2075_v7 = vperm.slane %v782_v5, 0  ;;  %v2078_v9 = vperm.slane %v782_v5, 1  ;;  %s1786_s10 = sshra.s32 %s2250_s13, 4  ;;  %s1792_s8 = scalar_lea.hbm %s2316_s4, 256  ;;  %s1787_s10 = int_to_ptr.hbm [resolvable:$true] %s1786_s10 }
  0x40   : > { %s1788_s30 = scalar_lea.hbm %s1787_s10, 128  ;;  %p1793_p10 = scmp.lt.s32.totalorder %s1787_s10, %s2316_s4 }
  0x41   : > { %538 = vmatpush.bf16.msra.mxu0 %v1302_v28  ;;  %1576 = vmatpush.bf16.msra.mxu2 %v1302_v28  ;;  %p1789_p1 = scmp.ne.s32.totalorder %s1787_s10, %s1788_s30  ;;  %p1794_p12 = scmp.lt.s32.totalorder %s1792_s8, %s1788_s30 }
  0x42   : > { %627 = vmatpush.bf16.msra.mxu1 %v1306_v29  ;;  %1584 = vmatpush.bf16.msra.mxu3 %v1306_v29 }
  0x43   : > { %p1790_p4 = pnand %p1789_p1, %p2013_p7  ;;  %p1795_p13 = por %p1794_p12, %p1793_p10 }
  0x45   : > { %539 = vmatpush.bf16.msra.mxu0 %v1294_v34  ;;  %1577 = vmatpush.bf16.msra.mxu2 %v1294_v34  ;;  %p1791_p8 = pneg %p1790_p4 }
  0x46   : > { %628 = vmatpush.bf16.msra.mxu1 %v1298_v35  ;;  %1585 = vmatpush.bf16.msra.mxu3 %v1298_v35 }
  0x47   : > { %p1796_p0 = pnand %p1795_p13, %p1791_p8 }
  0x49   : > { %540 = vmatpush.bf16.msra.mxu0 %v1286_v40  ;;  %1578 = vmatpush.bf16.msra.mxu2 %v1286_v40 }
  0x4a   : > { %629 = vmatpush.bf16.msra.mxu1 %v1290_v41  ;;  %1586 = vmatpush.bf16.msra.mxu3 %v1290_v41 }
  0x4d   : > { %541 = vmatpush.bf16.msra.mxu0 %v1278_v46  ;;  %1579 = vmatpush.bf16.msra.mxu2 %v1278_v46 }
  0x4e   : > { %630 = vmatpush.bf16.msra.mxu1 %v1282_v47  ;;  %1587 = vmatpush.bf16.msra.mxu3 %v1282_v47 }
  0x50   : > { %542 = vmatmul.bf16.vlgmr.msra.gmra.mxu0 %v1348_v48  ;;  %582 = vmatmul.bf16.vlgmr.msra.gmra.mxu2 %v1356_v49 }
  0x51   : > { %631 = vmatmul.bf16.vlgmr.msra.gmra.mxu1 %v1348_v48  ;;  %671 = vmatmul.bf16.vlgmr.msra.gmra.mxu3 %v1356_v49 }
  0x60   : > { %547 = vmatmul.bf16.gmra.mxu0 %v1349_v50  ;;  %587 = vmatmul.bf16.gmra.mxu2 %v1357_v51 }
  0x61   : > { %636 = vmatmul.bf16.gmra.mxu1 %v1349_v50  ;;  %676 = vmatmul.bf16.gmra.mxu3 %v1357_v51 }
  0x70   : > { %552 = vmatmul.bf16.gmra.mxu0 %v1350_v52  ;;  %592 = vmatmul.bf16.gmra.mxu2 %v1358_v53 }
  0x71   : > { %641 = vmatmul.bf16.gmra.mxu1 %v1350_v52  ;;  %681 = vmatmul.bf16.gmra.mxu3 %v1358_v53 }
  0x80   : > { %557 = vmatmul.bf16.gmra.mxu0 %v1351_v54  ;;  %597 = vmatmul.bf16.gmra.mxu2 %v1359_v55 }
  0x81   : > { %646 = vmatmul.bf16.gmra.mxu1 %v1351_v54  ;;  %686 = vmatmul.bf16.gmra.mxu3 %v1359_v55 }
  0x90   : > { %562 = vmatmul.bf16.gmra.mxu0 %v1352_v56  ;;  %602 = vmatmul.bf16.gmra.mxu2 %v1360_v57 }
  0x91   : > { %651 = vmatmul.bf16.gmra.mxu1 %v1352_v56  ;;  %691 = vmatmul.bf16.gmra.mxu3 %v1360_v57 }
  0xa0   : > { %567 = vmatmul.bf16.gmra.mxu0 %v1353_v58  ;;  %607 = vmatmul.bf16.gmra.mxu2 %v1361_v59 }
  0xa1   : > { %656 = vmatmul.bf16.gmra.mxu1 %v1353_v58  ;;  %696 = vmatmul.bf16.gmra.mxu3 %v1361_v59 }
  0xb0   : > { %572 = vmatmul.bf16.gmra.mxu0 %v1354_v60  ;;  %612 = vmatmul.bf16.gmra.mxu2 %v1362_v61 }
  0xb1   : > { %661 = vmatmul.bf16.gmra.mxu1 %v1354_v60  ;;  %701 = vmatmul.bf16.gmra.mxu3 %v1362_v61 }
  0xc0   : > { %577 = vmatmul.bf16.gmra.mxu0 %v1355_v62  ;;  %617 = vmatmul.bf16.gmra.mxu2 %v1363_v63 }
  0xc1   : > { %666 = vmatmul.bf16.gmra.mxu1 %v1355_v62  ;;  %706 = vmatmul.bf16.gmra.mxu3 %v1363_v63 }
  0xcd   : > { %v543_v1 = vpop.f32.mrf.mxu0 }
  0xce   : > { %v632_v3 = vpop.f32.mrf.mxu1  ;;  %v718_v6 = vmul.f32 %v2067_v2, %v543_v1 }
  0xcf   : > { %v719_v8 = vmul.f32 %v2069_v4, %v632_v3 }
  0xd0   : > { %v788_v13 = vadd.f32 %v2075_v7, %v718_v6 }
  0xd1   : > { %v789_v16 = vadd.f32 %v2078_v9, %v719_v8 }
  0xd3   : > { %v583_v10 = vpop.f32.mrf.mxu2  ;;  %v916_v23 = vmax.f32 %v789_v16, 0.0 }
  0xd4   : > { %v672_v11 = vpop.f32.mrf.mxu3  ;;  %v750_v21 = vmul.f32 %v2067_v2, %v583_v10 }
  0xd5   : > { %v545_v12 = vpop.f32.mrf.mxu0  ;;  %v751_v19 = vmul.f32 %v2069_v4, %v672_v11 }
  0xd6   : > { %v720_v14 = vmul.f32 %v2067_v2, %v545_v12  ;;  %v634_v15 = vpop.f32.mrf.mxu1  ;;  %v820_v32 = vadd.f32 %v2075_v7, %v750_v21 }
  0xd7   : > { %v721_v17 = vmul.f32 %v2069_v4, %v634_v15  ;;  %v821_v28 = vadd.f32 %v2078_v9, %v751_v19 }
  0xd8   : > { %v790_v18 = vadd.f32 %v2075_v7, %v720_v14 }
  0xd9   : > { %v791_v20 = vadd.f32 %v2078_v9, %v721_v17  ;;  %v932_v37 = vmax.f32 %v821_v28, 0.0 }
  0xda   : > { %v1385_v22 = vpack.c.bf16 %v790_v18, %v788_v13 }
  0xdb   : > { %v917_v24 = vmax.f32 %v791_v20, 0.0  ;;  %v585_v25 = vpop.f32.mrf.mxu2 }
  0xdc   : > { %1386 = vst [vmem:[%s2089_s26] sm:$0xff] %v1385_v22   ;;  %v752_v26 = vmul.f32 %v2067_v2, %v585_v25  ;;  %v674_v27 = vpop.f32.mrf.mxu3 }
  0xdd   : > { %v1465_v29 = vpack.c.bf16 %v917_v24, %v916_v23  ;;  %v753_v30 = vmul.f32 %v2069_v4, %v674_v27  ;;  %v548_v31 = vpop.f32.mrf.mxu0 }
  0xde   : > { %v822_v33 = vadd.f32 %v2075_v7, %v752_v26  ;;  %v637_v34 = vpop.f32.mrf.mxu1  ;;  %v722_v39 = vmul.f32 %v2067_v2, %v548_v31 }
  0xdf   : > { %1466 = vst [vmem:[%s2098_s28] sm:$0xff] %v1465_v29   ;;  %v823_v35 = vadd.f32 %v2078_v9, %v753_v30  ;;  %v723_v41 = vmul.f32 %v2069_v4, %v637_v34 }
  0xe0   : > { %v1425_v36 = vpack.c.bf16 %v822_v33, %v820_v32  ;;  %v792_v45 = vadd.f32 %v2075_v7, %v722_v39 }
  0xe1   : > { %v933_v38 = vmax.f32 %v823_v35, 0.0  ;;  %v793_v48 = vadd.f32 %v2078_v9, %v723_v41 }
  0xe2   : > { %1549 = vst [vmem:[%s2089_s26 + $0x40] sm:$0xff] %v1425_v36  }
  0xe3   : > { %v1505_v40 = vpack.c.bf16 %v933_v38, %v932_v37  ;;  %v588_v42 = vpop.f32.mrf.mxu2  ;;  %v918_v55 = vmax.f32 %v793_v48, 0.0 }
  0xe4   : > { %v677_v43 = vpop.f32.mrf.mxu3  ;;  %v754_v53 = vmul.f32 %v2067_v2, %v588_v42 }
  0xe5   : > { %1564 = vst [vmem:[%s2098_s28 + $0x40] sm:$0xff] %v1505_v40   ;;  %v550_v44 = vpop.f32.mrf.mxu0  ;;  %v755_v51 = vmul.f32 %v2069_v4, %v677_v43 }
  0xe6   : > { %v724_v46 = vmul.f32 %v2067_v2, %v550_v44  ;;  %v639_v47 = vpop.f32.mrf.mxu1  ;;  %v824_v0 = vadd.f32 %v2075_v7, %v754_v53 }
  0xe7   : > { %v725_v49 = vmul.f32 %v2069_v4, %v639_v47  ;;  %v825_v60 = vadd.f32 %v2078_v9, %v755_v51 }
  0xe8   : > { %v794_v50 = vadd.f32 %v2075_v7, %v724_v46 }
  0xe9   : > { %v795_v52 = vadd.f32 %v2078_v9, %v725_v49  ;;  %v934_v8 = vmax.f32 %v825_v60, 0.0 }
  0xea   : > { %v1390_v54 = vpack.c.bf16 %v794_v50, %v792_v45 }
  0xeb   : > { %v919_v56 = vmax.f32 %v795_v52, 0.0  ;;  %v590_v57 = vpop.f32.mrf.mxu2 }
  0xec   : > { %1542 = vst [vmem:[%s2089_s26 + $0x8] sm:$0xff] %v1390_v54   ;;  %v756_v58 = vmul.f32 %v2067_v2, %v590_v57  ;;  %v679_v59 = vpop.f32.mrf.mxu3 }
  0xed   : > { %v1470_v61 = vpack.c.bf16 %v919_v56, %v918_v55  ;;  %v757_v62 = vmul.f32 %v2069_v4, %v679_v59  ;;  %v553_v63 = vpop.f32.mrf.mxu0 }
  0xee   : > { %v826_v1 = vadd.f32 %v2075_v7, %v756_v58  ;;  %v642_v3 = vpop.f32.mrf.mxu1  ;;  %v726_v11 = vmul.f32 %v2067_v2, %v553_v63 }
  0xef   : > { %1557 = vst [vmem:[%s2098_s28 + $0x8] sm:$0xff] %v1470_v61   ;;  %v827_v5 = vadd.f32 %v2078_v9, %v757_v62  ;;  %v727_v13 = vmul.f32 %v2069_v4, %v642_v3 }
  0xf0   : > { %v1430_v6 = vpack.c.bf16 %v826_v1, %v824_v0  ;;  %v796_v17 = vadd.f32 %v2075_v7, %v726_v11 }
  0xf1   : > { %v935_v10 = vmax.f32 %v827_v5, 0.0  ;;  %v797_v20 = vadd.f32 %v2078_v9, %v727_v13 }
  0xf2   : > { %1550 = vst [vmem:[%s2089_s26 + $0x48] sm:$0xff] %v1430_v6  }
  0xf3   : > { %v1510_v12 = vpack.c.bf16 %v935_v10, %v934_v8  ;;  %v593_v14 = vpop.f32.mrf.mxu2  ;;  %v920_v27 = vmax.f32 %v797_v20, 0.0 }
  0xf4   : > { %v682_v15 = vpop.f32.mrf.mxu3  ;;  %v758_v25 = vmul.f32 %v2067_v2, %v593_v14 }
  0xf5   : > { %1565 = vst [vmem:[%s2098_s28 + $0x48] sm:$0xff] %v1510_v12   ;;  %v555_v16 = vpop.f32.mrf.mxu0  ;;  %v759_v23 = vmul.f32 %v2069_v4, %v682_v15 }
  0xf6   : > { %v728_v18 = vmul.f32 %v2067_v2, %v555_v16  ;;  %v644_v19 = vpop.f32.mrf.mxu1  ;;  %v828_v36 = vadd.f32 %v2075_v7, %v758_v25 }
  0xf7   : > { %v729_v21 = vmul.f32 %v2069_v4, %v644_v19  ;;  %v829_v32 = vadd.f32 %v2078_v9, %v759_v23 }
  0xf8   : > { %v798_v22 = vadd.f32 %v2075_v7, %v728_v18 }
  0xf9   : > { %v799_v24 = vadd.f32 %v2078_v9, %v729_v21  ;;  %v936_v41 = vmax.f32 %v829_v32, 0.0 }
  0xfa   : > { %v1395_v26 = vpack.c.bf16 %v798_v22, %v796_v17 }
  0xfb   : > { %v921_v28 = vmax.f32 %v799_v24, 0.0  ;;  %v595_v29 = vpop.f32.mrf.mxu2 }
  0xfc   : > { %1543 = vst [vmem:[%s2089_s26 + $0x10] sm:$0xff] %v1395_v26   ;;  %v760_v30 = vmul.f32 %v2067_v2, %v595_v29  ;;  %v684_v31 = vpop.f32.mrf.mxu3 }
  0xfd   : > { %v1475_v33 = vpack.c.bf16 %v921_v28, %v920_v27  ;;  %v761_v34 = vmul.f32 %v2069_v4, %v684_v31  ;;  %v558_v35 = vpop.f32.mrf.mxu0 }
  0xfe   : > { %v830_v37 = vadd.f32 %v2075_v7, %v760_v30  ;;  %v647_v38 = vpop.f32.mrf.mxu1  ;;  %v730_v43 = vmul.f32 %v2067_v2, %v558_v35 }
  0xff   : > { %1558 = vst [vmem:[%s2098_s28 + $0x10] sm:$0xff] %v1475_v33   ;;  %v831_v39 = vadd.f32 %v2078_v9, %v761_v34  ;;  %v731_v45 = vmul.f32 %v2069_v4, %v647_v38 }
 0x100   : > { %v1435_v40 = vpack.c.bf16 %v830_v37, %v828_v36  ;;  %v800_v49 = vadd.f32 %v2075_v7, %v730_v43 }
 0x101   : > { %v937_v42 = vmax.f32 %v831_v39, 0.0  ;;  %v801_v52 = vadd.f32 %v2078_v9, %v731_v45 }
 0x102   : > { %1551 = vst [vmem:[%s2089_s26 + $0x50] sm:$0xff] %v1435_v40  }
 0x103   : > { %v1515_v44 = vpack.c.bf16 %v937_v42, %v936_v41  ;;  %v598_v46 = vpop.f32.mrf.mxu2  ;;  %v922_v59 = vmax.f32 %v801_v52, 0.0 }
 0x104   : > { %v687_v47 = vpop.f32.mrf.mxu3  ;;  %v762_v57 = vmul.f32 %v2067_v2, %v598_v46 }
 0x105   : > { %1566 = vst [vmem:[%s2098_s28 + $0x50] sm:$0xff] %v1515_v44   ;;  %v560_v48 = vpop.f32.mrf.mxu0  ;;  %v763_v55 = vmul.f32 %v2069_v4, %v687_v47 }
 0x106   : > { %v732_v50 = vmul.f32 %v2067_v2, %v560_v48  ;;  %v649_v51 = vpop.f32.mrf.mxu1  ;;  %v832_v6 = vadd.f32 %v2075_v7, %v762_v57 }
 0x107   : > { %v733_v53 = vmul.f32 %v2069_v4, %v649_v51  ;;  %v833_v0 = vadd.f32 %v2078_v9, %v763_v55 }
 0x108   : > { %v802_v54 = vadd.f32 %v2075_v7, %v732_v50 }
 0x109   : > { %v803_v56 = vadd.f32 %v2078_v9, %v733_v53  ;;  %v938_v13 = vmax.f32 %v833_v0, 0.0 }
 0x10a   : > { %v1400_v58 = vpack.c.bf16 %v802_v54, %v800_v49 }
 0x10b   : > { %v923_v60 = vmax.f32 %v803_v56, 0.0  ;;  %v600_v61 = vpop.f32.mrf.mxu2 }
 0x10c   : > { %1544 = vst [vmem:[%s2089_s26 + $0x18] sm:$0xff] %v1400_v58   ;;  %v764_v62 = vmul.f32 %v2067_v2, %v600_v61  ;;  %v689_v63 = vpop.f32.mrf.mxu3 }
 0x10d   : > { %v1480_v1 = vpack.c.bf16 %v923_v60, %v922_v59  ;;  %v765_v3 = vmul.f32 %v2069_v4, %v689_v63  ;;  %v563_v5 = vpop.f32.mrf.mxu0 }
 0x10e   : > { %v834_v8 = vadd.f32 %v2075_v7, %v764_v62  ;;  %v652_v10 = vpop.f32.mrf.mxu1  ;;  %v734_v15 = vmul.f32 %v2067_v2, %v563_v5 }
 0x10f   : > { %1559 = vst [vmem:[%s2098_s28 + $0x18] sm:$0xff] %v1480_v1   ;;  %v835_v11 = vadd.f32 %v2078_v9, %v765_v3  ;;  %v735_v17 = vmul.f32 %v2069_v4, %v652_v10 }
 0x110   : > { %v1440_v12 = vpack.c.bf16 %v834_v8, %v832_v6  ;;  %v804_v21 = vadd.f32 %v2075_v7, %v734_v15 }
 0x111   : > { %v939_v14 = vmax.f32 %v835_v11, 0.0  ;;  %v805_v24 = vadd.f32 %v2078_v9, %v735_v17 }
 0x112   : > { %1552 = vst [vmem:[%s2089_s26 + $0x58] sm:$0xff] %v1440_v12  }
 0x113   : > { %v1520_v16 = vpack.c.bf16 %v939_v14, %v938_v13  ;;  %v603_v18 = vpop.f32.mrf.mxu2  ;;  %v924_v31 = vmax.f32 %v805_v24, 0.0 }
 0x114   : > { %v692_v19 = vpop.f32.mrf.mxu3  ;;  %v766_v29 = vmul.f32 %v2067_v2, %v603_v18 }
 0x115   : > { %1567 = vst [vmem:[%s2098_s28 + $0x58] sm:$0xff] %v1520_v16   ;;  %v565_v20 = vpop.f32.mrf.mxu0  ;;  %v767_v27 = vmul.f32 %v2069_v4, %v692_v19 }
 0x116   : > { %v736_v22 = vmul.f32 %v2067_v2, %v565_v20  ;;  %v654_v23 = vpop.f32.mrf.mxu1  ;;  %v836_v40 = vadd.f32 %v2075_v7, %v766_v29 }
 0x117   : > { %v737_v25 = vmul.f32 %v2069_v4, %v654_v23  ;;  %v837_v36 = vadd.f32 %v2078_v9, %v767_v27 }
 0x118   : > { %v806_v26 = vadd.f32 %v2075_v7, %v736_v22 }
 0x119   : > { %v807_v28 = vadd.f32 %v2078_v9, %v737_v25  ;;  %v940_v45 = vmax.f32 %v837_v36, 0.0 }
 0x11a   : > { %v1405_v30 = vpack.c.bf16 %v806_v26, %v804_v21 }
 0x11b   : > { %v925_v32 = vmax.f32 %v807_v28, 0.0  ;;  %v605_v33 = vpop.f32.mrf.mxu2 }
 0x11c   : > { %1545 = vst [vmem:[%s2089_s26 + $0x20] sm:$0xff] %v1405_v30   ;;  %v768_v34 = vmul.f32 %v2067_v2, %v605_v33  ;;  %v694_v35 = vpop.f32.mrf.mxu3 }
 0x11d   : > { %v1485_v37 = vpack.c.bf16 %v925_v32, %v924_v31  ;;  %v769_v38 = vmul.f32 %v2069_v4, %v694_v35  ;;  %v568_v39 = vpop.f32.mrf.mxu0 }
 0x11e   : > { %v838_v41 = vadd.f32 %v2075_v7, %v768_v34  ;;  %v657_v42 = vpop.f32.mrf.mxu1  ;;  %v738_v47 = vmul.f32 %v2067_v2, %v568_v39 }
 0x11f   : > { %1560 = vst [vmem:[%s2098_s28 + $0x20] sm:$0xff] %v1485_v37   ;;  %v839_v43 = vadd.f32 %v2078_v9, %v769_v38  ;;  %v739_v49 = vmul.f32 %v2069_v4, %v657_v42 }
 0x120   : > { %v1445_v44 = vpack.c.bf16 %v838_v41, %v836_v40  ;;  %v808_v53 = vadd.f32 %v2075_v7, %v738_v47 }
 0x121   : > { %v941_v46 = vmax.f32 %v839_v43, 0.0  ;;  %v809_v56 = vadd.f32 %v2078_v9, %v739_v49 }
 0x122   : > { %1553 = vst [vmem:[%s2089_s26 + $0x60] sm:$0xff] %v1445_v44  }
 0x123   : > { %v1525_v48 = vpack.c.bf16 %v941_v46, %v940_v45  ;;  %v608_v50 = vpop.f32.mrf.mxu2  ;;  %v926_v63 = vmax.f32 %v809_v56, 0.0 }
 0x124   : > { %v697_v51 = vpop.f32.mrf.mxu3  ;;  %v770_v61 = vmul.f32 %v2067_v2, %v608_v50 }
 0x125   : > { %1568 = vst [vmem:[%s2098_s28 + $0x60] sm:$0xff] %v1525_v48   ;;  %v570_v52 = vpop.f32.mrf.mxu0  ;;  %v771_v59 = vmul.f32 %v2069_v4, %v697_v51 }
 0x126   : > { %v740_v54 = vmul.f32 %v2067_v2, %v570_v52  ;;  %v659_v55 = vpop.f32.mrf.mxu1  ;;  %v840_v12 = vadd.f32 %v2075_v7, %v770_v61 }
 0x127   : > { %v741_v57 = vmul.f32 %v2069_v4, %v659_v55  ;;  %v841_v6 = vadd.f32 %v2078_v9, %v771_v59 }
 0x128   : > { %v810_v58 = vadd.f32 %v2075_v7, %v740_v54 }
 0x129   : > { %v811_v60 = vadd.f32 %v2078_v9, %v741_v57  ;;  %v942_v17 = vmax.f32 %v841_v6, 0.0 }
 0x12a   : > { %v1410_v62 = vpack.c.bf16 %v810_v58, %v808_v53 }
 0x12b   : > { %v927_v0 = vmax.f32 %v811_v60, 0.0  ;;  %v610_v1 = vpop.f32.mrf.mxu2 }
 0x12c   : > { %1546 = vst [vmem:[%s2089_s26 + $0x28] sm:$0xff] %v1410_v62   ;;  %v772_v3 = vmul.f32 %v2067_v2, %v610_v1  ;;  %v699_v5 = vpop.f32.mrf.mxu3 }
 0x12d   : > { %v1490_v8 = vpack.c.bf16 %v927_v0, %v926_v63  ;;  %v773_v10 = vmul.f32 %v2069_v4, %v699_v5  ;;  %v573_v11 = vpop.f32.mrf.mxu0 }
 0x12e   : > { %v842_v13 = vadd.f32 %v2075_v7, %v772_v3  ;;  %v662_v14 = vpop.f32.mrf.mxu1  ;;  %v742_v19 = vmul.f32 %v2067_v2, %v573_v11 }
 0x12f   : > { %1561 = vst [vmem:[%s2098_s28 + $0x28] sm:$0xff] %v1490_v8   ;;  %v843_v15 = vadd.f32 %v2078_v9, %v773_v10  ;;  %v743_v21 = vmul.f32 %v2069_v4, %v662_v14 }
 0x130   : > { %v1450_v16 = vpack.c.bf16 %v842_v13, %v840_v12  ;;  %v812_v25 = vadd.f32 %v2075_v7, %v742_v19 }
 0x131   : > { %v943_v18 = vmax.f32 %v843_v15, 0.0  ;;  %v813_v28 = vadd.f32 %v2078_v9, %v743_v21 }
 0x132   : > { %1554 = vst [vmem:[%s2089_s26 + $0x68] sm:$0xff] %v1450_v16  }
 0x133   : > { %v1530_v20 = vpack.c.bf16 %v943_v18, %v942_v17  ;;  %v613_v22 = vpop.f32.mrf.mxu2  ;;  %v928_v35 = vmax.f32 %v813_v28, 0.0 }
 0x134   : > { %v702_v23 = vpop.f32.mrf.mxu3  ;;  %v774_v33 = vmul.f32 %v2067_v2, %v613_v22 }
 0x135   : > { %1569 = vst [vmem:[%s2098_s28 + $0x68] sm:$0xff] %v1530_v20   ;;  %v575_v24 = vpop.f32.mrf.mxu0  ;;  %v775_v31 = vmul.f32 %v2069_v4, %v702_v23 }
 0x136   : > { %v744_v26 = vmul.f32 %v2067_v2, %v575_v24  ;;  %v664_v27 = vpop.f32.mrf.mxu1  ;;  %v844_v44 = vadd.f32 %v2075_v7, %v774_v33 }
 0x137   : > { %v745_v29 = vmul.f32 %v2069_v4, %v664_v27  ;;  %v845_v40 = vadd.f32 %v2078_v9, %v775_v31 }
 0x138   : > { %v814_v30 = vadd.f32 %v2075_v7, %v744_v26 }
 0x139   : > { %v815_v32 = vadd.f32 %v2078_v9, %v745_v29  ;;  %v944_v49 = vmax.f32 %v845_v40, 0.0 }
 0x13a   : > { %v1415_v34 = vpack.c.bf16 %v814_v30, %v812_v25 }
 0x13b   : > { %v929_v36 = vmax.f32 %v815_v32, 0.0  ;;  %v615_v37 = vpop.f32.mrf.mxu2 }
 0x13c   : > { %1547 = vst [vmem:[%s2089_s26 + $0x30] sm:$0xff] %v1415_v34   ;;  %v776_v38 = vmul.f32 %v2067_v2, %v615_v37  ;;  %v704_v39 = vpop.f32.mrf.mxu3 }
 0x13d   : > { %v1495_v41 = vpack.c.bf16 %v929_v36, %v928_v35  ;;  %v777_v42 = vmul.f32 %v2069_v4, %v704_v39  ;;  %v578_v43 = vpop.f32.mrf.mxu0 }
 0x13e   : > { %v846_v45 = vadd.f32 %v2075_v7, %v776_v38  ;;  %v667_v46 = vpop.f32.mrf.mxu1  ;;  %v746_v51 = vmul.f32 %v2067_v2, %v578_v43 }
 0x13f   : > { %1562 = vst [vmem:[%s2098_s28 + $0x30] sm:$0xff] %v1495_v41   ;;  %v847_v47 = vadd.f32 %v2078_v9, %v777_v42  ;;  %v747_v53 = vmul.f32 %v2069_v4, %v667_v46 }
 0x140   : > { %v1455_v48 = vpack.c.bf16 %v846_v45, %v844_v44  ;;  %v816_v57 = vadd.f32 %v2075_v7, %v746_v51 }
 0x141   : > { %v945_v50 = vmax.f32 %v847_v47, 0.0  ;;  %v817_v60 = vadd.f32 %v2078_v9, %v747_v53 }
 0x142   : > { %1555 = vst [vmem:[%s2089_s26 + $0x70] sm:$0xff] %v1455_v48  }
 0x143   : > { %v1535_v52 = vpack.c.bf16 %v945_v50, %v944_v49  ;;  %v618_v54 = vpop.f32.mrf.mxu2  ;;  %v930_v5 = vmax.f32 %v817_v60, 0.0 }
 0x144   : > { %v707_v55 = vpop.f32.mrf.mxu3  ;;  %v778_v1 = vmul.f32 %v2067_v2, %v618_v54 }
 0x145   : > { %1570 = vst [vmem:[%s2098_s28 + $0x70] sm:$0xff] %v1535_v52   ;;  %v580_v56 = vpop.f32.mrf.mxu0  ;;  %v779_v63 = vmul.f32 %v2069_v4, %v707_v55 }
 0x146   : > { %v748_v58 = vmul.f32 %v2067_v2, %v580_v56  ;;  %v669_v59 = vpop.f32.mrf.mxu1  ;;  %v848_v15 = vadd.f32 %v2075_v7, %v778_v1 }
 0x147   : > { %v749_v61 = vmul.f32 %v2069_v4, %v669_v59  ;;  %v849_v12 = vadd.f32 %v2078_v9, %v779_v63 }
 0x148   : > { %v818_v62 = vadd.f32 %v2075_v7, %v748_v58 }
 0x149   : > { %v819_v0 = vadd.f32 %v2078_v9, %v749_v61  ;;  %v946_v18 = vmax.f32 %v849_v12, 0.0 }
 0x14a   : > { %v1420_v3 = vpack.c.bf16 %v818_v62, %v816_v57 }
 0x14b   : > { %v931_v6 = vmax.f32 %v819_v0, 0.0  ;;  %v620_v8 = vpop.f32.mrf.mxu2 }
 0x14c   : > { %1548 = vst [vmem:[%s2089_s26 + $0x38] sm:$0xff] %v1420_v3   ;;  %v780_v10 = vmul.f32 %v2067_v2, %v620_v8  ;;  %v709_v11 = vpop.f32.mrf.mxu3 }
 0x14d   : > { %v1500_v13 = vpack.c.bf16 %v931_v6, %v930_v5  ;;  %v781_v14 = vmul.f32 %v2069_v4, %v709_v11 }
 0x14e   : > { %v850_v16 = vadd.f32 %v2075_v7, %v780_v10 }
 0x14f   : > { %1563 = vst [vmem:[%s2098_s28 + $0x38] sm:$0xff] %v1500_v13   ;;  %v851_v2 = vadd.f32 %v2078_v9, %v781_v14 }
 0x150   : > { %v1460_v17 = vpack.c.bf16 %v850_v16, %v848_v15 }
 0x151   : > { %v947_v19 = vmax.f32 %v851_v2, 0.0 }
 0x152   : > { %1556 = vst [vmem:[%s2089_s26 + $0x78] sm:$0xff] %v1460_v17  }
 0x153   : > { %v1540_v4 = vpack.c.bf16 %v947_v19, %v946_v18 }
 0x154   : > { %1799 = shalt.err (!%p1796_p0)
}
 0x155   : > { %s1898_s26 = smov 64   ;;  %s1899_s11 = smov 4   ;;  %1571 = vst [vmem:[%s2098_s28 + $0x78] sm:$0xff] %v1540_v4  }
 0x156   : > { %1598 = dma.vmem_to_hbm [thread:$0]  (%p2013_p7), %s2248_s21, 2048, %s2250_s13, %s1013_s7, %s1898_s26, %s1898_s26, %s1899_s11  }
 0x157   : > { %s1018_s14 = scalar_lea.sflag [#allocation10], %s2034_s25  ;;  %s1814_s15 = sshra.s32 %s2258_s27, 4  ;;  %s1815_s15 = int_to_ptr.hbm [resolvable:$true] %s1814_s15 }
 0x158   : > { %s1816_s16 = scalar_lea.hbm %s1815_s15, 128  ;;  %s1820_s1 = scalar_lea.hbm %s2317_s5, 256 }
 0x159   : > { %p1817_p3 = scmp.ne.s32.totalorder %s1815_s15, %s1816_s16  ;;  %p1821_p2 = scmp.lt.s32.totalorder %s1815_s15, %s2317_s5 }
 0x15a   : > { %p1822_p1 = scmp.lt.s32.totalorder %s1820_s1, %s1816_s16 }
 0x15b   : > { %p1818_p5 = pnand %p1817_p3, %p2013_p7 }
 0x15c   : > { %p1823_p4 = por %p1822_p1, %p1821_p2 }
 0x15d   : > { %p1819_p9 = pneg %p1818_p5 }
 0x15f   : > { %p1824_p8 = pnand %p1823_p4, %p1819_p9 }
 0x161   : > { %1827 = shalt.err (!%p1824_p8)
}
 0x162   : > { %1599 = dma.vmem_to_hbm [thread:$0]  (%p2013_p7), %s2256_s17, 2048, %s2258_s27, %s1018_s14, %s1898_s26, %s1898_s26, %s1899_s11  }
 0x163 PF: > { %s1068_s25 = sand.u32 1, %s1870_s18   ;;  %p1614_p10 = pnand %p1201_p11, %p1979_p6 }
 0x164   : > { %s1069_s28 = scalar_lea.sflag [#allocation4], %s1068_s25 }
 0x165   : > { %p1615_p12 = pneg %p1614_p10 }
 0x167   : > { %1861 = dma.done.wait (%p1615_p12), %s1069_s28, 2048  }
 0x168   : > { %1863 = vsyncadd (%p1615_p12), %s1069_s28, 4294965248  ;;  %s1079_s21 = scalar_lea.sflag [#allocation10], %s1068_s25 }
 0x169   : > { %1865 = dma.done.wait (%p1615_p12), %s1079_s21, 2048  }
 0x16a   : > { %1867 = vsyncadd (%p1615_p12), %s1079_s21, 4294965248  ;;  %s26_s23 = sadd.s32 1, %s1890_s23   ;;  %s2331_s6 = sld [smem:[#allocation15_spill]] }
 0x16b   : > { %p23_p13 = scmp.ge.s32.totalorder %s26_s23, 4   ;;  %s2332_s18 = smov %s1874_s19 }
 0x16c   : > { %s2333_s19 = smov %s1878_s20  ;;  %s2334_s20 = smov %s2022_s12 }
 0x16d   : > { %s2335_s21 = smov %s1886_s22  ;;  %25 = sbr.rel (!%p23_p13) target bundleno = 12 (0xc), region = 106 }
 0x170   : > { %s2336_s22 = smov %s2331_s6 }
 0x172   :  { %1085 = vsyncpa [#allocation3], 1 }
 0x173   :  { %1087 = vsyncpa [#allocation3 + $0x1], 1 }
 0x174   :  { %1088 = vsyncpa [#allocation6], 1 }
 0x175   :  { %1089 = vsyncpa [#allocation4], 1 }
 0x176   :  { %1091 = vsyncpa [#allocation4 + $0x1], 1 }
 0x177   :  { %1092 = vsyncpa [#allocation10], 1 }
 0x178   :  { %1094 = vsyncpa [#allocation10 + $0x1], 1 }

</bundles_post_ra>
